<compile_context>
chip_gen: v5e
topology: v5e:2x2
jax: 0.10.0
libtpu: 0.0.40
codegen_flags: <defaults>
</compile_context>

<pallas_src>
import jax
import jax.numpy as jnp
from jax.experimental import pallas as pl
from jax.experimental.pallas import tpu as pltpu

_LANE = 128
# Per-tile byte budget.  BlockSpec double-buffers each operand, so the resident
# VMEM working set is ~4x this (2 in-buffers + 2 out-buffers) ~= 32 MiB, which
# fits v7x's 64 MiB physical VMEM with headroom and is far below v5e/v6e's 128 MiB.
_TILE_BUDGET_BYTES = 8 * 1024 * 1024
# Raise the scoped-VMEM ceiling above the defaults (16 MiB v5e / 32 MiB v6e,v7x)
# while staying safely under v7x's 64 MiB physical VMEM.
_VMEM_LIMIT_BYTES = 48 * 1024 * 1024


def _ident_kernel(x_ref, o_ref):
    # Pure passthrough of the current tile (one unmasked vld/vst stream).
    o_ref[...] = x_ref[...]


def _sublane_multiple(dtype) -> int:
    # Packed-sublane granularity: 8 rows for 32-bit, 16 for 16-bit, 32 for 8-bit.
    return {4: 8, 2: 16, 1: 32}.get(jnp.dtype(dtype).itemsize, 8)


def _lane_dense_2d(x: jax.Array, sublane: int) -> jax.Array:
    """Reshape x to (rows, cols) with cols a large multiple of 128 when possible."""
    n = x.size
    if n % _LANE == 0:
        divs = [c for c in (4096, 2048, 1024, 512, 256, _LANE) if n % c == 0]
        # Prefer the widest lane extent that still leaves a full sublane group of
        # rows, so both the lane and sublane dims stay unmasked.
        for c in divs:
            if n // c >= sublane:
                return x.reshape(n // c, c)
        if divs:
            return x.reshape(n // divs[0], divs[0])
    # Fallback (total size not a multiple of 128): keep the trailing dim as the
    # lane axis; full-extent column blocks are legal for any width.
    if x.ndim >= 2:
        return x.reshape(-1, x.shape[-1])
    return x.reshape(1, -1)


def _choose_tile_rows(rows: int, cols: int, dtype) -> int:
    """Largest sublane-aligned row tile fitting the VMEM budget; grid >= 2 if possible."""
    itemsize = jnp.dtype(dtype).itemsize
    sublane = _sublane_multiple(dtype)
    bytes_per_row = max(1, cols * itemsize)
    max_rows = max(1, _TILE_BUDGET_BYTES // bytes_per_row)
    tile = min(rows, max_rows)
    if tile >= sublane:
        tile = (tile // sublane) * sublane
    # If everything fits in one block but there is enough work, split into >= 2
    # grid steps so v7x can shard the parallel axis across both TensorCores.
    if tile == rows and rows >= 2 * sublane:
        half = (rows + 1) // 2
        half = ((half + sublane - 1) // sublane) * sublane
        tile = min(tile, half)
    return max(1, tile)


def ident(x: jax.Array) -> jax.Array:
    """Identity forward pass implemented with a Pallas TPU kernel."""
    orig_shape = x.shape
    if x.size == 0:
        return x  # nothing to copy

    sublane = _sublane_multiple(x.dtype)
    x2 = _lane_dense_2d(x, sublane)
    rows, cols = x2.shape
    tile_rows = _choose_tile_rows(rows, cols, x2.dtype)
    # Partial last block (when tile_rows does not divide rows) is masked by Pallas.
    grid = (pl.cdiv(rows, tile_rows),)

    out2 = pl.pallas_call(
        _ident_kernel,
        out_shape=jax.ShapeDtypeStruct((rows, cols), x2.dtype),
        grid_spec=pl.GridSpec(
            grid=grid,
            in_specs=[pl.BlockSpec((tile_rows, cols), lambda i: (i, 0))],
            out_specs=pl.BlockSpec((tile_rows, cols), lambda i: (i, 0)),
        ),
        # Identity needs no second HBM buffer: alias input 0 to output 0 so the
        # writeback / output allocation can be elided when the caller donates
        # the input (correct either way; XLA copies defensively if not donated).
        input_output_aliases={0: 0},
        compiler_params=pltpu.CompilerParams(
            dimension_semantics=("parallel",),
            vmem_limit_bytes=_VMEM_LIMIT_BYTES,
        ),
        cost_estimate=pl.CostEstimate(
            flops=0,
            transcendentals=0,
            bytes_accessed=2 * x.size * jnp.dtype(x.dtype).itemsize,
        ),
    )(x2)

    return out2.reshape(orig_shape)


if __name__ == "__main__":
    key = jax.random.PRNGKey(0)
    # NCHW input, consistent with PyTorch conv-style feature maps.
    x = jax.random.normal(key, (2, 4, 16, 16), dtype=jnp.float32)

    y = jax.block_until_ready(ident(x))

    assert y.shape == x.shape
    assert y.dtype == x.dtype
    assert bool(jnp.all(y == x))

    print("KERNEL_OK")
</pallas_src>

<mosaic_0001>
module attributes {stable_mosaic.version = 11 : i64} {
  func.func @_ident_kernel(%arg0: i32, %arg1: memref<8x256xf32, #tpu.memory_space<vmem>>, %arg2: memref<8x256xf32, #tpu.memory_space<vmem>>) attributes {dimension_semantics = [#tpu.dimension_semantics<parallel>], iteration_bounds = array<i64: 1>, scalar_prefetch = 0 : i64, scratch_operands = 0 : i64, tpu.core_type = #tpu.core_type<tc>, window_params = [{transform_indices = @transform_0, window_bounds = array<i64: 8, 256>}, {transform_indices = @transform_1, window_bounds = array<i64: 8, 256>}]} {
    %c0 = arith.constant 0 : index
    %c0_0 = arith.constant 0 : index
    %0 = vector.load %arg1[%c0, %c0_0] : memref<8x256xf32, #tpu.memory_space<vmem>>, vector<8x256xf32>
    %c0_1 = arith.constant 0 : index
    %c0_2 = arith.constant 0 : index
    %1 = vector.load %arg2[%c0_1, %c0_2] : memref<8x256xf32, #tpu.memory_space<vmem>>, vector<8x256xf32>
    tpu.vector_store %arg2[%c0_1, %c0_2], %0 {strides = array<i32>} : memref<8x256xf32, #tpu.memory_space<vmem>>, vector<8x256xf32>,
    return
  }
  func.func @transform_0(%arg0: i32) -> (i32, i32) {
    %c0_i32 = arith.constant 0 : i32
    %c0_i32_0 = arith.constant 0 : i32
    return %arg0, %c0_i32 : i32, i32
  }
  func.func @transform_1(%arg0: i32) -> (i32, i32) {
    %c0_i32 = arith.constant 0 : i32
    %c0_i32_0 = arith.constant 0 : i32
    return %arg0, %c0_i32 : i32, i32
  }
}

</mosaic_0001>

<bundles_post_ra>
// kernel: tpu_custom_call.1
= control target key start
LH: loop header
LB: loop body
LE: loop exit
PB: predicated region body
PF: predicated region fallthrough
CT: control target
= control target key end

     0   :  { %6 = vsyncpa [#allocation3], 0  ;;  %s116_s0 = inlined_call_operand.hbm [shape: f32[8,256], index: 0, kind: input, shape index: {}, may-alias: {0,1}]   ;;  %s117_s1 = inlined_call_operand.hbm [shape: f32[8,256], index: 1, kind: output, shape index: {}, may-alias: {0,1}]  }
   0x1   :  { %7 = vsyncpa [#allocation4], 0  ;;  %s13_s8 = sshll.u32 %s116_s0, 4  ;;  %s98_s9 = smov [#allocation2]   ;;  %s14_s8 = int_to_ptr.hbm [resolvable:$true] %s13_s8 }
   0x2   :  { %s15_s10 = sshll.u32 %s98_s9, 4  ;;  %s16_s10 = int_to_ptr.vmem [resolvable:$true] %s15_s10 }
   0x3   :  { %18 = dma.hbm_to_vmem [thread:$0]  %s14_s8, 256, %s16_s10, [#allocation3]  }
   0x4   :  { %94 = dma.done.wait [#allocation3], 256  }
   0x5   :  { %95 = vsyncadd [#allocation3], 4294967040  ;;  %s99_s11 = smov [#allocation5]   ;;  %s34_s15 = sshll.u32 %s117_s1, 4  ;;  %v23_v0 = vld [vmem:[#allocation2] sm:$0xff]  ;;  %v24_v1 = vld [vmem:[#allocation2 + $0x8] sm:$0xff]  ;;  %s35_s15 = int_to_ptr.hbm [resolvable:$true] %s34_s15 }
   0x6   :  { %s32_s12 = sshll.u32 %s99_s11, 4  ;;  %25 = vst [vmem:[#allocation5] sm:$0xff] %v23_v0  ;;  %s33_s12 = int_to_ptr.vmem [resolvable:$true] %s32_s12 }
   0x7   :  { %26 = vst [vmem:[#allocation5 + $0x8] sm:$0xff] %v24_v1 }
   0x8   :  { %37 = dma.vmem_to_hbm [thread:$0]  %s33_s12, 256, %s35_s15, [#allocation4]  }
   0x9   :  { %96 = dma.done.wait [#allocation4], 256  }
   0xa   :  { %97 = vsyncadd [#allocation4], 4294967040 }
   0xb   :  { %42 = vsyncpa [#allocation3], 1 }
   0xc   :  { %43 = vsyncpa [#allocation4], 1 }

</bundles_post_ra>
